<compile_context>
chip_gen: v7x
topology: tpu7x:2x2x1
jax: 0.10.0
libtpu: 0.0.40
codegen_flags: <defaults>
</compile_context>

<pallas_src>
import math
import functools

import jax
import jax.numpy as jnp
from jax.experimental import pallas as pl
from jax.experimental.pallas import tpu as pltpu


# ---------------------------------------------------------------------------
# Static L-Softmax constants (mirror of the module's __init__)
# ---------------------------------------------------------------------------
def lsoftmax_constants(margin: int):
    # C_m_2n = binom(margin, [0, 2, 4, ...])
    c_m_2n = [float(math.comb(margin, n)) for n in range(0, margin + 1, 2)]
    cos_powers = list(range(margin, -1, -2))          # [m, m-2, ..., 0/1]
    sin2_powers = list(range(len(cos_powers)))        # [0, 1, 2, ...]
    signs = [1.0 if (i % 2 == 0) else -1.0 for i in range(margin // 2 + 1)]
    # k = #{ j in 1..m-1 : clamp(cos) <= cos(j*pi/m) }  ==  floor(acos(clamp(cos)) / (pi/m))
    thresholds = [math.cos(j * math.pi / margin) for j in range(1, margin)]
    return c_m_2n, cos_powers, sin2_powers, signs, thresholds


# ---------------------------------------------------------------------------
# Pallas kernel
# ---------------------------------------------------------------------------
def _lsoftmax_kernel(flag_ref,                         # scalar-prefetch: (gi*gj,) int32 in SMEM
                     x_ref, w_ref, side_ref,           # inputs: x tile, w tile, (tm,2) side
                     o_ref,                            # output tile (resident across K)
                     *, margin: int, beta: float,
                     n_k_steps: int, n_col_tiles: int):
    # --- all grid-position reads at TOP LEVEL (never inside pl.when bodies) ---
    i = pl.program_id(0)
    j = pl.program_id(1)
    kstep = pl.program_id(2)
    is_first = kstep == 0
    is_last = kstep == n_k_steps - 1
    tile_has_target = flag_ref[i * n_col_tiles + j] != 0

    tm, tn = o_ref.shape
    col_base = j * tn

    # Matmul partial on the MXU in native (bf16) input dtype with f32 accumulation.
    part = jnp.dot(x_ref[...], w_ref[...], preferred_element_type=jnp.float32)

    @pl.when(is_first)
    def _():
        o_ref[...] = part

    @pl.when(jnp.logical_not(is_first))
    def _():
        o_ref[...] += part

    # Epilogue: only on the final K step, and only for tiles that actually contain a
    # target column.  For all other tiles the accumulated logits are already final.
    @pl.when(jnp.logical_and(is_last, tile_has_target))
    def _():
        logit = o_ref[...]                                          # (tm, tn) f32

        side = side_ref[...]                                        # (tm, 2) f32
        norm_prod = side[:, 0:1]                                    # (tm, 1) ||x_i|| * ||w_t(i)||
        tgt = side[:, 1:2].astype(jnp.int32)                        # (tm, 1) target index

        col_ids = col_base + jax.lax.broadcasted_iota(jnp.int32, (tm, tn), 1)
        is_target = col_ids == tgt                                  # (tm, tn)

        # Extract per-row target-column logit (masked row-sum).  Rows whose target lives
        # in another column tile get logit_t = 0 here; the values computed for them below
        # are discarded by the final select.
        logit_t = jnp.sum(jnp.where(is_target, logit, 0.0), axis=1, keepdims=True)  # (tm,1)

        cos_theta = logit_t / (norm_prod + 1e-10)                   # (tm, 1)

        # cos(m*theta) via the binomial expansion (uses UNclamped cos, as in torch ref),
        # only on a (tm, 1) vector.
        c_m_2n, cos_pows, sin2_pows, signs, thresholds = lsoftmax_constants(margin)
        sin2_theta = 1.0 - cos_theta * cos_theta
        cos_m_theta = jnp.zeros_like(cos_theta)
        for n in range(margin // 2 + 1):
            cos_m_theta += (signs[n] * c_m_2n[n]
                            * (cos_theta ** int(cos_pows[n]))
                            * (sin2_theta ** int(sin2_pows[n])))

        # k = floor(acos(clamp(cos)) / (pi/m)) computed by threshold counting (no acos).
        eps = 1e-7
        cos_clamped = jnp.clip(cos_theta, -1.0 + eps, 1.0 - eps)
        k_int = jnp.zeros(cos_theta.shape, jnp.int32)
        for thr in thresholds:
            k_int += (cos_clamped <= thr).astype(jnp.int32)
        k_f = k_int.astype(jnp.float32)
        sign_k = 1.0 - 2.0 * (k_int & 1).astype(jnp.float32)        # (-1)^k without modulo

        upd = norm_prod * (sign_k * cos_m_theta - 2.0 * k_f)        # (tm, 1)
        upd_beta = (upd + beta * logit_t) / (1.0 + beta)            # (tm, 1)

        o_ref[...] = jnp.where(is_target, upd_beta, logit).astype(o_ref.dtype)


# ---------------------------------------------------------------------------
# Wrapper
# ---------------------------------------------------------------------------
def _pick_vmem_limit() -> int:
    # min(64 MiB, 3/4 of physical VMEM): 64 MiB on v5e/v6e (128 MiB phys),
    # 48 MiB on v7x (64 MiB phys).  Fall back to 48 MiB (safe on every generation).
    try:
        phys = pltpu.get_tpu_info().vmem_capacity_bytes
        return int(min(64 * 1024 * 1024, (phys * 3) // 4))
    except Exception:
        return 48 * 1024 * 1024


def lsoftmax_linear_forward(x, w, target, *, margin: int, beta: float,
                            tm: int = 512, tn: int = 1024, tk: int = 1024,
                            use_bf16_matmul: bool = True):
    B, D = x.shape
    D2, C = w.shape
    assert D == D2

    # Clamp tiles to the problem size (small problems collapse to few grid points).
    tm, tn, tk = min(tm, B), min(tn, C), min(tk, D)
    assert B % tm == 0 and C % tn == 0 and D % tk == 0

    # v7x has 2 TensorCores: if the whole problem collapses to a single (i, j) output
    # tile, halve tm so the parallel grid has 2 iterations and both cores get work.
    # (On v5e/v6e this just adds one tiny extra grid step.)
    if (B // tm) * (C // tn) == 1 and tm % 16 == 0 and B % (tm // 2) == 0:
        tm //= 2

    assert tm == B or tm % 8 == 0
    assert tn == C or tn % 128 == 0
    assert tk == D or tk % 128 == 0

    gi, gj, gk = B // tm, C // tn, D // tk

    target_i32 = target.astype(jnp.int32)

    # Norms (and the per-row target-column norm product) precomputed once, in f32,
    # from the ORIGINAL-precision inputs -- matches the torch reference math.
    x_f32 = x.astype(jnp.float32)
    w_f32 = w.astype(jnp.float32)
    x_norm = jnp.sqrt(jnp.sum(jnp.square(x_f32), axis=1))           # (B,)
    w_norm = jnp.sqrt(jnp.sum(jnp.square(w_f32), axis=0))           # (C,)
    norm_prod = x_norm * w_norm[target_i32]                         # (B,) ||x_i|| * ||w_t(i)||

    # Single packed per-row side input: [norm_prod, target-as-float]  -> one narrow DMA
    # stream / one VMEM block instead of three.
    side = jnp.stack([norm_prod, target_i32.astype(jnp.float32)], axis=1)  # (B, 2) f32

    # Feed the MXU bf16 (all three generations have bf16-native MXUs; f32 matmul is
    # emulated as multiple passes).  Accumulation stays f32 inside the kernel.
    if use_bf16_matmul and x.dtype == jnp.float32:
        x_mm = x.astype(jnp.bfloat16)
        w_mm = w.astype(jnp.bfloat16)
    else:
        x_mm, w_mm = x, w

    # Per-(row-tile, col-tile) "contains a target column" flag, scalar-prefetched into SMEM.
    row_tile = jnp.arange(B, dtype=jnp.int32) // tm
    col_tile = target_i32 // tn
    flag = jnp.zeros((gi * gj,), jnp.int32).at[row_tile * gj + col_tile].set(1)

    kernel = functools.partial(_lsoftmax_kernel, margin=margin, beta=float(beta),
                               n_k_steps=gk, n_col_tiles=gj)

    return pl.pallas_call(
        kernel,
        out_shape=jax.ShapeDtypeStruct((B, C), jnp.float32),
        grid_spec=pltpu.PrefetchScalarGridSpec(
            num_scalar_prefetch=1,
            grid=(gi, gj, gk),
            in_specs=[
                pl.BlockSpec((tm, tk), lambda i, j, k, flag: (i, k)),   # x (bf16)
                pl.BlockSpec((tk, tn), lambda i, j, k, flag: (k, j)),   # w (bf16)
                pl.BlockSpec((tm, 2), lambda i, j, k, flag: (i, 0)),    # packed [norm_prod, tgt]
            ],
            out_specs=pl.BlockSpec((tm, tn), lambda i, j, k, flag: (i, j)),
        ),
        compiler_params=pltpu.CompilerParams(
            dimension_semantics=("parallel", "parallel", "arbitrary"),
            vmem_limit_bytes=_pick_vmem_limit()),
    )(flag, x_mm, w_mm, side)


# ---------------------------------------------------------------------------
# Pure-JAX references (for correctness check)
# ---------------------------------------------------------------------------
def lsoftmax_linear_reference(x, w, target, *, margin: int, beta: float,
                              matmul_dtype=None):
    c_m_2n, cos_pows, sin2_pows, signs, _ = lsoftmax_constants(margin)
    divisor = math.pi / margin

    if matmul_dtype is not None:
        logit = jnp.dot(x.astype(matmul_dtype), w.astype(matmul_dtype),
                        preferred_element_type=jnp.float32)
    else:
        logit = x @ w
    idx = jnp.arange(x.shape[0])
    logit_t = logit[idx, target]
    w_t_norm = jnp.linalg.norm(w[:, target], axis=0)
    x_norm = jnp.linalg.norm(x, axis=1)
    cos_theta = logit_t / (w_t_norm * x_norm + 1e-10)

    sin2 = 1.0 - cos_theta ** 2
    cos_m = jnp.zeros_like(cos_theta)
    for n in range(margin // 2 + 1):
        cos_m += signs[n] * c_m_2n[n] * (cos_theta ** int(cos_pows[n])) * (sin2 ** int(sin2_pows[n]))

    eps = 1e-7
    cos_c = jnp.clip(cos_theta, -1.0 + eps, 1.0 - eps)
    k = jnp.floor(jnp.arccos(cos_c) / divisor)

    logit_t_updated = w_t_norm * x_norm * (((-1.0) ** k) * cos_m - 2.0 * k)
    logit_t_beta = (logit_t_updated + beta * logit_t) / (1.0 + beta)
    return logit.at[idx, target].set(logit_t_beta)


# ---------------------------------------------------------------------------
if __name__ == "__main__":
    # Small shapes consistent with the module: B=64 samples, D=256 features, C=128 classes.
    B, D, C = 64, 256, 128
    margin = 4
    beta = 100.0  # beta = max(self.beta, self.beta_min) on the first forward
    # TODO(synk): self.beta *= self.scale is training-loop state mutation; it does not
    # affect a single forward's output and is not modeled here.

    key = jax.random.PRNGKey(0)
    kx, kw, kt = jax.random.split(key, 3)

    x = jax.random.normal(kx, (B, D), dtype=jnp.float32)
    # kaiming_normal_ on weight.t() (shape (C, D)) -> std = sqrt(2 / fan_in) = sqrt(2/D)
    w = jax.random.normal(kw, (D, C), dtype=jnp.float32) * math.sqrt(2.0 / D)
    target = jax.random.randint(kt, (B,), 0, C, dtype=jnp.int32)

    out = lsoftmax_linear_forward(x, w, target, margin=margin, beta=beta)
    out = jax.block_until_ready(out)
    assert out.shape == (B, C)

    # Tight check against a reference that uses the same bf16-matmul / f32-norm precision
    # choice as the kernel (validates the kernel logic exactly).
    ref_bf16 = lsoftmax_linear_reference(x, w, target, margin=margin, beta=beta,
                                         matmul_dtype=jnp.bfloat16)
    ref_bf16 = jax.block_until_ready(ref_bf16)
    assert jnp.allclose(out, ref_bf16, atol=2e-3, rtol=2e-3), (
        f"max abs err vs bf16 ref = {jnp.max(jnp.abs(out - ref_bf16))}")

    # Looser check against the full-f32 reference (module semantics within bf16-MXU noise).
    ref_f32 = lsoftmax_linear_reference(x, w, target, margin=margin, beta=beta)
    ref_f32 = jax.block_until_ready(ref_f32)
    assert jnp.allclose(out, ref_f32, atol=5e-2, rtol=5e-2), (
        f"max abs err vs f32 ref = {jnp.max(jnp.abs(out - ref_f32))}")

    print("KERNEL_OK")
</pallas_src>

<mosaic_0001>
module attributes {stable_mosaic.version = 11 : i64} {
  func.func @_lsoftmax_kernel(%arg0: i32, %arg1: i32, %arg2: i32, %arg3: memref<2xi32, #tpu.memory_space<smem>>, %arg4: memref<32x256xbf16, #tpu.memory_space<vmem>>, %arg5: memref<256x128xbf16, #tpu.memory_space<vmem>>, %arg6: memref<32x2xf32, #tpu.memory_space<vmem>>, %arg7: memref<32x128xf32, #tpu.memory_space<vmem>>) attributes {dimension_semantics = [#tpu.dimension_semantics<parallel>, #tpu.dimension_semantics<parallel>, #tpu.dimension_semantics<arbitrary>], iteration_bounds = array<i64: 2, 1, 1>, scalar_prefetch = 1 : i64, scratch_operands = 0 : i64, tpu.core_type = #tpu.core_type<tc>, window_params = [{transform_indices = @transform_0, window_bounds = array<i64: 32, 256>}, {transform_indices = @transform_1, window_bounds = array<i64: 256, 128>}, {transform_indices = @transform_2, window_bounds = array<i64: 32, 2>}, {transform_indices = @transform_3, window_bounds = array<i64: 32, 128>}]} {
    %c0_i32 = arith.constant 0 : i32
    %0 = arith.cmpi eq, %arg2, %c0_i32 : i32
    %c0_i32_0 = arith.constant 0 : i32
    %1 = arith.cmpi eq, %arg2, %c0_i32_0 : i32
    %c1_i32 = arith.constant 1 : i32
    %2 = arith.muli %arg0, %c1_i32 : i32
    %3 = arith.addi %2, %arg1 : i32
    %4 = arith.index_cast %3 : i32 to index
    %5 = memref.load %arg3[%4] : memref<2xi32, #tpu.memory_space<smem>>
    %c0_i32_1 = arith.constant 0 : i32
    %6 = arith.cmpi ne, %5, %c0_i32_1 : i32
    %c128_i32 = arith.constant 128 : i32
    %7 = arith.muli %arg1, %c128_i32 : i32
    %c0 = arith.constant 0 : index
    %c0_2 = arith.constant 0 : index
    %8 = vector.load %arg4[%c0, %c0_2] : memref<32x256xbf16, #tpu.memory_space<vmem>>, vector<32x256xbf16>
    %c0_3 = arith.constant 0 : index
    %c0_4 = arith.constant 0 : index
    %9 = vector.load %arg5[%c0_3, %c0_4] : memref<256x128xbf16, #tpu.memory_space<vmem>>, vector<256x128xbf16>
    %cst = arith.constant dense<0.000000e+00> : vector<32x128xf32>
    %10 = tpu.matmul %8, %9, %cst {dimension_numbers = #tpu.dot_dimension_numbers<[1], [0], [0], [1], [0, 0, 1, 1], [], []>} : vector<32x256xbf16>, vector<256x128xbf16>, vector<32x128xf32> -> vector<32x128xf32>
    %11 = arith.extui %0 : i1 to i32
    %c0_i32_5 = arith.constant 0 : i32
    %12 = arith.cmpi ne, %11, %c0_i32_5 : i32
    scf.if %12 {
      %c0_8 = arith.constant 0 : index
      %c0_9 = arith.constant 0 : index
      %19 = vector.load %arg7[%c0_8, %c0_9] : memref<32x128xf32, #tpu.memory_space<vmem>>, vector<32x128xf32>
      tpu.vector_store %arg7[%c0_8, %c0_9], %10 {strides = array<i32>} : memref<32x128xf32, #tpu.memory_space<vmem>>, vector<32x128xf32>,
    } else {
    }
    %true = arith.constant true
    %13 = arith.xori %0, %true : i1
    %14 = arith.extui %13 : i1 to i32
    %c0_i32_6 = arith.constant 0 : i32
    %15 = arith.cmpi ne, %14, %c0_i32_6 : i32
    scf.if %15 {
      %c0_8 = arith.constant 0 : index
      %c0_9 = arith.constant 0 : index
      %19 = vector.load %arg7[%c0_8, %c0_9] : memref<32x128xf32, #tpu.memory_space<vmem>>, vector<32x128xf32>
      %20 = arith.addf %19, %10 : vector<32x128xf32>
      %c0_10 = arith.constant 0 : index
      %c0_11 = arith.constant 0 : index
      %21 = vector.load %arg7[%c0_10, %c0_11] : memref<32x128xf32, #tpu.memory_space<vmem>>, vector<32x128xf32>
      tpu.vector_store %arg7[%c0_10, %c0_11], %20 {strides = array<i32>} : memref<32x128xf32, #tpu.memory_space<vmem>>, vector<32x128xf32>,
    } else {
    }
    %16 = arith.andi %1, %6 : i1
    %17 = arith.extui %16 : i1 to i32
    %c0_i32_7 = arith.constant 0 : i32
    %18 = arith.cmpi ne, %17, %c0_i32_7 : i32
    scf.if %18 {
      %c0_8 = arith.constant 0 : index
      %c0_9 = arith.constant 0 : index
      %19 = vector.load %arg7[%c0_8, %c0_9] : memref<32x128xf32, #tpu.memory_space<vmem>>, vector<32x128xf32>
      %c0_10 = arith.constant 0 : index
      %c0_11 = arith.constant 0 : index
      %20 = vector.load %arg6[%c0_10, %c0_11] : memref<32x2xf32, #tpu.memory_space<vmem>>, vector<32x2xf32>
      %21 = vector.extract_strided_slice %20 {offsets = [0, 0], sizes = [32, 1], strides = [1, 1]} : vector<32x2xf32> to vector<32x1xf32>
      %22 = vector.extract_strided_slice %20 {offsets = [0, 1], sizes = [32, 1], strides = [1, 1]} : vector<32x2xf32> to vector<32x1xf32>
      %23 = arith.fptosi %22 : vector<32x1xf32> to vector<32x1xi32>
      %24 = tpu.iota {dimensions = array<i32: 1>} : vector<32x128xi32>
      %25 = vector.broadcast %7 : i32 to vector<32x128xi32>
      %26 = arith.addi %25, %24 : vector<32x128xi32>
      %27 = vector.broadcast %23 : vector<32x1xi32> to vector<32x128xi32>
      %28 = arith.cmpi eq, %26, %27 : vector<32x128xi32>
      %cst_12 = arith.constant 0.000000e+00 : f32
      %29 = vector.broadcast %cst_12 : f32 to vector<32x128xf32>
      %30 = arith.select %28, %19, %29 : vector<32x128xi1>, vector<32x128xf32>
      %cst_13 = arith.constant dense<0.000000e+00> : vector<32xf32>
      %31 = vector.multi_reduction <add>, %30, %cst_13 [1] : vector<32x128xf32> to vector<32xf32>
      %32 = vector.shape_cast %31 : vector<32xf32> to vector<32x1xf32>
      %cst_14 = arith.constant 1.000000e-10 : f32
      %33 = vector.broadcast %cst_14 : f32 to vector<32x1xf32>
      %34 = arith.addf %21, %33 : vector<32x1xf32>
      %35 = arith.divf %32, %34 : vector<32x1xf32>
      %36 = arith.mulf %35, %35 : vector<32x1xf32>
      %cst_15 = arith.constant 1.000000e+00 : f32
      %37 = vector.broadcast %cst_15 : f32 to vector<32x1xf32>
      %38 = arith.subf %37, %36 : vector<32x1xf32>
      %cst_16 = arith.constant 0.000000e+00 : f32
      %39 = vector.broadcast %cst_16 : f32 to vector<32x1xf32>
      %40 = arith.mulf %35, %35 : vector<32x1xf32>
      %41 = arith.mulf %40, %40 : vector<32x1xf32>
      %cst_17 = arith.constant 1.000000e+00 : f32
      %42 = vector.broadcast %cst_17 : f32 to vector<32x1xf32>
      %43 = arith.mulf %42, %41 : vector<32x1xf32>
      %cst_18 = arith.constant 1.000000e+00 : f32
      %44 = vector.broadcast %cst_18 : f32 to vector<32x1xf32>
      %45 = arith.mulf %43, %44 : vector<32x1xf32>
      %46 = arith.addf %39, %45 : vector<32x1xf32>
      %47 = arith.mulf %35, %35 : vector<32x1xf32>
      %cst_19 = arith.constant -6.000000e+00 : f32
      %48 = vector.broadcast %cst_19 : f32 to vector<32x1xf32>
      %49 = arith.mulf %48, %47 : vector<32x1xf32>
      %50 = arith.mulf %49, %38 : vector<32x1xf32>
      %51 = arith.addf %46, %50 : vector<32x1xf32>
      %cst_20 = arith.constant 1.000000e+00 : f32
      %52 = vector.broadcast %cst_20 : f32 to vector<32x1xf32>
      %cst_21 = arith.constant 1.000000e+00 : f32
      %53 = vector.broadcast %cst_21 : f32 to vector<32x1xf32>
      %54 = arith.mulf %53, %52 : vector<32x1xf32>
      %55 = arith.mulf %38, %38 : vector<32x1xf32>
      %56 = arith.mulf %54, %55 : vector<32x1xf32>
      %57 = arith.addf %51, %56 : vector<32x1xf32>
      %cst_22 = arith.constant -0.99999988 : f32
      %cst_23 = arith.constant 0.99999988 : f32
      %58 = vector.broadcast %cst_22 : f32 to vector<32x1xf32>
      %59 = arith.maximumf %58, %35 : vector<32x1xf32>
      %60 = vector.broadcast %cst_23 : f32 to vector<32x1xf32>
      %61 = arith.minimumf %60, %59 : vector<32x1xf32>
      %c0_i32_24 = arith.constant 0 : i32
      %62 = vector.broadcast %c0_i32_24 : i32 to vector<32x1xi32>
      %cst_25 = arith.constant 0.707106769 : f32
      %63 = vector.broadcast %cst_25 : f32 to vector<32x1xf32>
      %64 = arith.cmpf ole, %61, %63 : vector<32x1xf32>
      %65 = arith.extui %64 : vector<32x1xi1> to vector<32x1xi32>
      %66 = arith.addi %62, %65 : vector<32x1xi32>
      %cst_26 = arith.constant 6.12323426E-17 : f32
      %67 = vector.broadcast %cst_26 : f32 to vector<32x1xf32>
      %68 = arith.cmpf ole, %61, %67 : vector<32x1xf32>
      %69 = arith.extui %68 : vector<32x1xi1> to vector<32x1xi32>
      %70 = arith.addi %66, %69 : vector<32x1xi32>
      %cst_27 = arith.constant -0.707106769 : f32
      %71 = vector.broadcast %cst_27 : f32 to vector<32x1xf32>
      %72 = arith.cmpf ole, %61, %71 : vector<32x1xf32>
      %73 = arith.extui %72 : vector<32x1xi1> to vector<32x1xi32>
      %74 = arith.addi %70, %73 : vector<32x1xi32>
      %75 = arith.sitofp %74 : vector<32x1xi32> to vector<32x1xf32>
      %c1_i32_28 = arith.constant 1 : i32
      %76 = vector.broadcast %c1_i32_28 : i32 to vector<32x1xi32>
      %77 = arith.andi %74, %76 : vector<32x1xi32>
      %78 = arith.sitofp %77 : vector<32x1xi32> to vector<32x1xf32>
      %cst_29 = arith.constant 2.000000e+00 : f32
      %79 = vector.broadcast %cst_29 : f32 to vector<32x1xf32>
      %80 = arith.mulf %79, %78 : vector<32x1xf32>
      %cst_30 = arith.constant 1.000000e+00 : f32
      %81 = vector.broadcast %cst_30 : f32 to vector<32x1xf32>
      %82 = arith.subf %81, %80 : vector<32x1xf32>
      %83 = arith.mulf %82, %57 : vector<32x1xf32>
      %cst_31 = arith.constant 2.000000e+00 : f32
      %84 = vector.broadcast %cst_31 : f32 to vector<32x1xf32>
      %85 = arith.mulf %84, %75 : vector<32x1xf32>
      %86 = arith.subf %83, %85 : vector<32x1xf32>
      %87 = arith.mulf %21, %86 : vector<32x1xf32>
      %cst_32 = arith.constant 1.000000e+02 : f32
      %88 = vector.broadcast %cst_32 : f32 to vector<32x1xf32>
      %89 = arith.mulf %88, %32 : vector<32x1xf32>
      %90 = arith.addf %87, %89 : vector<32x1xf32>
      %cst_33 = arith.constant 1.010000e+02 : f32
      %91 = vector.broadcast %cst_33 : f32 to vector<32x1xf32>
      %92 = arith.divf %90, %91 : vector<32x1xf32>
      %93 = vector.shape_cast %92 : vector<32x1xf32> to vector<32x1xf32>
      %94 = vector.broadcast %93 : vector<32x1xf32> to vector<32x128xf32>
      %95 = arith.select %28, %94, %19 : vector<32x128xi1>, vector<32x128xf32>
      %c0_34 = arith.constant 0 : index
      %c0_35 = arith.constant 0 : index
      %96 = vector.load %arg7[%c0_34, %c0_35] : memref<32x128xf32, #tpu.memory_space<vmem>>, vector<32x128xf32>
      tpu.vector_store %arg7[%c0_34, %c0_35], %95 {strides = array<i32>} : memref<32x128xf32, #tpu.memory_space<vmem>>, vector<32x128xf32>,
    } else {
    }
    return
  }
  func.func @transform_0(%arg0: i32, %arg1: i32, %arg2: i32, %arg3: memref<2xi32, #tpu.memory_space<smem>>) -> (i32, i32) {
    %c0_i32 = arith.constant 0 : i32
    return %arg0, %arg2 : i32, i32
  }
  func.func @transform_1(%arg0: i32, %arg1: i32, %arg2: i32, %arg3: memref<2xi32, #tpu.memory_space<smem>>) -> (i32, i32) {
    %c0_i32 = arith.constant 0 : i32
    return %arg2, %arg1 : i32, i32
  }
  func.func @transform_2(%arg0: i32, %arg1: i32, %arg2: i32, %arg3: memref<2xi32, #tpu.memory_space<smem>>) -> (i32, i32) {
    %c0_i32 = arith.constant 0 : i32
    %c0_i32_0 = arith.constant 0 : i32
    return %arg0, %c0_i32 : i32, i32
  }
  func.func @transform_3(%arg0: i32, %arg1: i32, %arg2: i32, %arg3: memref<2xi32, #tpu.memory_space<smem>>) -> (i32, i32) {
    %c0_i32 = arith.constant 0 : i32
    return %arg0, %arg1 : i32, i32
  }
}

</mosaic_0001>

<bundles_post_ra>
// kernel: tpu_custom_call.1
= control target key start
LH: loop header
LB: loop body
LE: loop exit
PB: predicated region body
PF: predicated region fallthrough
CT: control target
= control target key end

     0   :  { %s1497_s0 = inlined_call_operand.vmem [shape: s32[2], index: 0, kind: input, shape index: {}]   ;;  %s1498_s1 = inlined_call_operand.vmem [shape: bf16[64,256], index: 1, kind: input, shape index: {}]   ;;  %s1499_s2 = inlined_call_operand.hbm [shape: bf16[256,128], index: 2, kind: input, shape index: {}]   ;;  %s1500_s3 = inlined_call_operand.vmem [shape: f32[64,2], index: 3, kind: input, shape index: {}]   ;;  %s1501_s4 = inlined_call_operand.hbm [shape: f32[64,128], index: 4, kind: output, shape index: {}]  }
   0x1   :  { %s9_s17 = sshll.u32 %s1497_s0, 4  ;;  %s10_s17 = int_to_ptr.vmem [resolvable:$true] %s9_s17 }
   0x2   :  { %s1040_s18 = scalar_lea.vmem %s10_s17, 16  ;;  %p1045_p1 = scmp.lt.s32.totalorder %s10_s17, %s10_s17 }
   0x3   :  { %p1041_p0 = scmp.ne.s32.totalorder %s10_s17, %s1040_s18  ;;  %p1046_p2 = scmp.lt.s32.totalorder %s1040_s18, %s1040_s18 }
   0x5   :  { %p1047_p3 = por %p1046_p2, %p1045_p1 }
   0x7   :  { %p1048_p4 = pnand %p1047_p3, %p1041_p0 }
   0x9   :  { %1051 = shalt.err (!%p1048_p4)  }
   0xa   :  { %s1166_s19 = smov [#allocation3]  }
   0xb   :  { %12 = dma.vmem_to_smem %s10_s17, 16, %s1166_s19, [#allocation2] }
   0xc   :  { %1132 = dma.done.wait [#allocation2], 16 }
   0xd   :  { %1133 = vsyncadd [#allocation2], 4294967280 }
   0xe   :  { %14 = sfence }
   0xf   :  { %15 = vsyncpa [#allocation5], 0 }
  0x10   :  { %16 = vsyncpa [#allocation6], 0 }
  0x11   :  { %18 = vsyncpa [#allocation6 + $0x1], 0  ;;  %s1203_s20 = smov 0   ;;  %s1205_s21 = smov 0  }
  0x12   :  { %s1207_s0 = smov 0   ;;  %s1209_s22 = smov 0  }
  0x13   :  { %s1211_s23 = smov 0   ;;  %s1213_s24 = smov 0  }
  0x14 LB: > { %s835_s25 = sadd.s32 4294967295, %s1164_s24   ;;  %s836_s26 = sadd.s32 4294967294, %s1164_s24   ;;  %s1164_s24 = sphi %s1213_s24, %s24_s24   ;;  %s1160_s23 = sphi %s1211_s23, %s1519_s23   ;;  %s1156_s22 = sphi %s1209_s22, %s1518_s22   ;;  %s1152_s0 = sphi %s1207_s0, %s1517_s0   ;;  %s1148_s21 = sphi %s1205_s21, %s1516_s21   ;;  %s1144_s20 = sphi %s1203_s20, %s1515_s20  }
  0x15   : > { %s43_s27 = sadd.s32 1, %s1160_s23  ;;  %s134_s28 = sadd.s32 1, %s1152_s0 }
  0x16   : > { %p45_p5 = scmp.ge.s32.totalorder %s43_s27, 2  ;;  %p144_p6 = scmp.ne.s32.totalorder %s1152_s0, %s1148_s21 }
  0x17   : > { %p145_p7 = scmp.eq.s32.totalorder %s835_s25, 1  ;;  %p150_p8 = scmp.ne.s32.totalorder %s1148_s21, %s1144_s20 }
  0x18   : > { %s1521_s27 = smov (%p45_p5, %s43_s27), 0  ;;  %p151_p10 = scmp.eq.s32.totalorder %s836_s26, 1 }
  0x19   : > { %p1243_p9 = por %p145_p7, %p144_p6  ;;  %s129_s30 = ssub.s32 %s1160_s23, %s1521_s27 }
  0x1a   : > { %p837_p11 = scmp.ge.s32.totalorder %s1164_s24, 1  ;;  %p132_p12 = scmp.eq.s32.totalorder %s129_s30, 0 }
  0x1b   : > { %s1506_s29 = scalar_select %p1243_p9, 1, 0 }
  0x1c   : > { %p1250_p13 = por %p151_p10, %p150_p8  ;;  %p158_p0 = scmp.lt.s32.totalorder %s1164_s24, 3 }
  0x1d   : > { %s1256_s6 = scalar_select %p132_p12, %s1152_s0, %s134_s28  }
  0x1e   : > { %s1507_s5 = scalar_select %p1250_p13, 1, 0 }
  0x1f   : > { %p1258_p1 = pnand %p837_p11, %p158_p0  ;;  %p1262_p2 = scmp.eq.s32.totalorder %s835_s25, 0 }
  0x20   : > { %s1167_s9 = smov [#allocation4]   ;;  %s1052_s14 = scalar_lea.hbm %s1499_s2, 2048 }
  0x21   : > { %s1508_s7 = scalar_select %p1258_p1, 1, 0 }
  0x22   : > { %s1509_s8 = scalar_select %p1262_p2, 1, 0 }
  0x23   : > { %p939_p3 = pneg %p1258_p1  ;;  %s174_s10 = sshll.u32 %s1167_s9, 4  ;;  %s175_s10 = int_to_ptr.vmem [resolvable:$true] %s174_s10 }
  0x24   : > { %p1053_p5 = scmp.ne.s32.totalorder %s1499_s2, %s1052_s14  ;;  %p1059_p10 = scmp.lt.u32.totalorder %s1052_s14, %s1499_s2 }
  0x25   : > { %p1270_p4 = pnand %p1262_p2, %p939_p3 }
  0x27   : > { %p1054_p6 = pneg %p1270_p4 }
  0x29   : > { %p1055_p7 = pnand %p1054_p6, %p1053_p5 }
  0x2b   : > { %p1056_p8 = pneg %p1055_p7 }
  0x2d   : > { %p1061_p11 = pnand %p1059_p10, %p1056_p8 }
  0x2f   : > { %1064 = shalt.err (!%p1061_p11)
}
  0x30   : > { %s1065_s19 = scalar_lea.vmem %s175_s10, 2048  ;;  %p1073_p13 = scmp.lt.s32.totalorder %s175_s10, %s175_s10 }
  0x31   : > { %p1066_p12 = scmp.ne.s32.totalorder %s175_s10, %s1065_s19  ;;  %p1074_p9 = scmp.lt.s32.totalorder %s1065_s19, %s1065_s19 }
  0x33   : > { %p1068_p0 = pnand %p1066_p12, %p1054_p6  ;;  %p1075_p2 = por %p1074_p9, %p1073_p13 }
  0x35   : > { %p1069_p3 = pneg %p1068_p0 }
  0x37   : > { %p1076_p1 = pnand %p1075_p2, %p1069_p3 }
  0x39   : > { %1079 = shalt.err (!%p1076_p1)
}
  0x3a   : > { %s1168_s25 = smov 64   ;;  %s1169_s26 = smov 4  }
  0x3b   : > { %942 = dma.hbm_to_vmem [thread:$0]  (!%p1270_p4), %s1499_s2, 2048, %s175_s10, [#allocation5], %s1168_s25, %s1168_s25, %s1169_s26  }
  0x3c   : > { %p1511_p5 = scmp.ne.s32.totalorder %s1508_s7, 0 }
  0x3d   : > { %p1512_p7 = scmp.ne.s32.totalorder (!%p1511_p5), %s1509_s8, 0 }
  0x3e   : > { %214 = sbr.rel (%p1511_p5) target bundleno = 671 (0x29f), region = 32 }
  0x45   : > { %1135 = dma.done.wait (%p1512_p7), [#allocation5], 2048  }
  0x46   : > { %1137 = vsyncadd (%p1512_p7), [#allocation5], 4294965248  ;;  %s843_s9 = sshll.u32 %s1156_s22, 2  ;;  %s1298_s12 = sld [smem:[#allocation3 + %s1156_s22]]  ;;  %v1006_v0 = vld [vmem:[#allocation4 + $0x40] sm:$0xff]   ;;  %v1008_v2 = vld [vmem:[#allocation4 + $0x48] sm:$0xff]  }
  0x47   : > { %p250_p9 = scmp.lt.s32.totalorder %s843_s9, 7  ;;  %v1007_v1 = vld [vmem:[#allocation4] sm:$0xff]   ;;  %881 = vmatprep.subr.bf16.mxu0 %v1006_v0  ;;  %909 = vmatprep.subr.bf16.mxu1 %v1006_v0  ;;  %v1009_v3 = vld [vmem:[#allocation4 + $0x8] sm:$0xff]   ;;  %v1010_v4 = vld [vmem:[#allocation4 + $0x50] sm:$0xff]   ;;  %s245_s16 = sand.u32 1, %s1148_s21  }
  0x48   : > { %882 = vmatpush3.bf16.msra.mxu0 %v1007_v1  ;;  %917 = vmatpush3.bf16.msra.mxu1 %v1007_v1  ;;  %v1011_v5 = vld [vmem:[#allocation4 + $0x10] sm:$0xff]   ;;  %v1012_v6 = vld [vmem:[#allocation4 + $0x58] sm:$0xff]   ;;  %v1014_v8 = vld [vmem:[#allocation4 + $0x60] sm:$0xff]   ;;  %s842_s17 = sshll.u32 %s245_s16, 5 }
  0x49   : > { %s1523_s9 = smov (!%p250_p9, %s843_s9), 7  ;;  %883 = vmatprep.subr.bf16.mxu0 %v1008_v2  ;;  %910 = vmatprep.subr.bf16.mxu1 %v1008_v2  ;;  %v1013_v7 = vld [vmem:[#allocation4 + $0x18] sm:$0xff]   ;;  %v1015_v9 = vld [vmem:[#allocation4 + $0x20] sm:$0xff]   ;;  %v1016_v10 = vld [vmem:[#allocation4 + $0x68] sm:$0xff]   ;;  %s1312_s18 = scalar_lea.vmem [#allocation7], %s842_s17 }
  0x4a   : > { %s878_s11 = sshll.u32 %s1523_s9, 3  ;;  %v1017_v13 = vld [vmem:[#allocation4 + $0x28] sm:$0xff]   ;;  %v1018_v14 = vld [vmem:[#allocation4 + $0x70] sm:$0xff]   ;;  %v1020_v16 = vld [vmem:[#allocation4 + $0x78] sm:$0xff]  }
  0x4b   : > { %s1303_s7 = scalar_lea.vmem %s1500_s3, %s878_s11  ;;  %s257_s15 = scalar_lea.vmem %s1498_s1, %s878_s11  ;;  %v1019_v15 = vld [vmem:[#allocation4 + $0x30] sm:$0xff]   ;;  %v1021_v17 = vld [vmem:[#allocation4 + $0x38] sm:$0xff]  }
  0x4c   : > { %p272_p13 = scmp.ne.s32.totalorder %s1298_s12, 0  ;;  %884 = vmatpush3.bf16.msra.mxu0 %v1009_v3  ;;  %918 = vmatpush3.bf16.msra.mxu1 %v1009_v3  ;;  %v1024_v11 = vld [vmem:[%s257_s15 + $0x4] ss:$8 sps:$4 sm:$0xff]   ;;  %v1027_v12 = vld [vmem:[%s257_s15 + $0x14] ss:$8 sps:$4 sm:$0xff]  }
  0x4d   : > { %885 = vmatprep.subr.bf16.mxu0 %v1010_v4  ;;  %911 = vmatprep.subr.bf16.mxu1 %v1010_v4  ;;  %v1022_v18 = vld [vmem:[%s257_s15] ss:$8 sps:$4 sm:$0xff]   ;;  %v1025_v19 = vld [vmem:[%s257_s15 + $0x10] ss:$8 sps:$4 sm:$0xff]   ;;  %v1170_v35 = vmov (%p272_p13), 1   ;;  %v1171_v45 = vmov (%p272_p13), 0   ;;  %v514_v46 = vlaneseq (%p272_p13) }
  0x4e   : > { %458 = vmatprep.mubr.bf16.mxu0 %v1024_v11  ;;  %466 = vmatprep.mubr.bf16.mxu1 %v1027_v12  ;;  %v1321_v32 = vld [vmem:[%s1303_s7 + $0x10] sm:$0xff] (%p272_p13)  ;;  %v1324_v33 = vld [vmem:[%s1303_s7] sm:$0xff] (%p272_p13)  ;;  %v1327_v34 = vld [vmem:[%s1303_s7 + $0x18] sm:$0xff] (%p272_p13) }
  0x4f   : > { %1029 = vset.pattern.permute.xlu1 (%p272_p13), %v1170_v35  ;;  %1028 = vset.pattern.permute.xlu0 (%p272_p13), %v1170_v35  ;;  %v929_v36 = vtrunc.f32 (%p272_p13), %v1321_v32  ;;  %v925_v37 = vtrunc.f32 (%p272_p13), %v1324_v33  ;;  %v1332_v38 = vld [vmem:[%s1303_s7 + $0x8] sm:$0xff] (%p272_p13)  ;;  %v931_v39 = vtrunc.f32 (%p272_p13), %v1327_v34  ;;  %v1338_v47 = vand.u32 (%p272_p13), 127, %v514_v46 }
  0x50   : > { %886 = vmatpush3.bf16.msra.mxu0 %v1011_v5  ;;  %919 = vmatpush3.bf16.msra.mxu1 %v1011_v5  ;;  %v927_v40 = vtrunc.f32 (%p272_p13), %v1332_v38  ;;  %v546_v60 = vadd.f32 (%p272_p13), 1e-10, %v1324_v33  ;;  %v547_v61 = vadd.f32 (%p272_p13), 1e-10, %v1332_v38  ;;  %v548_v62 = vadd.f32 (%p272_p13), 1e-10, %v1321_v32 }
  0x51   : > { %887 = vmatprep.subr.bf16.mxu0 %v1012_v6  ;;  %912 = vmatprep.subr.bf16.mxu1 %v1012_v6  ;;  %v930_v41 = vcvt.f32.s32 (%p272_p13), %v929_v36  ;;  %v926_v42 = vcvt.f32.s32 (%p272_p13), %v925_v37  ;;  %v932_v43 = vcvt.f32.s32 (%p272_p13), %v931_v39  ;;  %v549_v0 = vadd.f32 (%p272_p13), 1e-10, %v1327_v34 }
  0x52   : > { %v928_v44 = vcvt.f32.s32 (%p272_p13), %v927_v40  ;;  %1032 = vrcp.f32 (%p272_p13), %v546_v60 }
  0x53   : > { %525 = vperm.xlu1 (%p272_p13), %1029, %v930_v41   ;;  %519 = vperm.xlu0 (%p272_p13), %1028, %v926_v42   ;;  %1034 = vrcp.f32 (%p272_p13), %v547_v61 }
  0x54   : > { %888 = vmatpush3.bf16.msra.mxu0 %v1013_v7  ;;  %920 = vmatpush3.bf16.msra.mxu1 %v1013_v7  ;;  %1036 = vrcp.f32 (%p272_p13), %v548_v62 }
  0x55   : > { %889 = vmatprep.subr.bf16.mxu0 %v1014_v8  ;;  %913 = vmatprep.subr.bf16.mxu1 %v1014_v8  ;;  %1038 = vrcp.f32 (%p272_p13), %v549_v0 }
  0x57   : > { %528 = vperm.xlu1 (%p272_p13), %1029, %v932_v43   ;;  %522 = vperm.xlu0 (%p272_p13), %1028, %v928_v44  }
  0x58   : > { %890 = vmatpush3.bf16.msra.mxu0 %v1015_v9  ;;  %921 = vmatpush3.bf16.msra.mxu1 %v1015_v9 }
  0x59   : > { %891 = vmatprep.subr.bf16.mxu0 %v1016_v10  ;;  %914 = vmatprep.subr.bf16.mxu1 %v1016_v10 }
  0x5b   : > { %1030 = vset.pattern.permute.xlu1 (%p272_p13), %v1171_v45  ;;  %1031 = vset.pattern.permute.xlu0 (%p272_p13), %v1171_v45 }
  0x5c   : > { %892 = vmatpush3.bf16.msra.mxu0 %v1017_v13  ;;  %922 = vmatpush3.bf16.msra.mxu1 %v1017_v13  ;;  %v1033_v63 = vpop.eup (%p272_p13), %1032 }
  0x5d   : > { %893 = vmatprep.subr.bf16.mxu0 %v1018_v14  ;;  %915 = vmatprep.subr.bf16.mxu1 %v1018_v14  ;;  %v1035_v3 = vpop.eup (%p272_p13), %1034 }
  0x5e   : > { %v1037_v9 = vpop.eup (%p272_p13), %1036 }
  0x60   : > { %894 = vmatpush3.bf16.msra.mxu0 %v1019_v15  ;;  %923 = vmatpush3.bf16.msra.mxu1 %v1019_v15 }
  0x61   : > { %895 = vmatprep.subr.bf16.mxu0 %v1020_v16  ;;  %916 = vmatprep.subr.bf16.mxu1 %v1020_v16 }
  0x64   : > { %896 = vmatpush3.bf16.msra.mxu0 %v1021_v17  ;;  %924 = vmatpush3.bf16.msra.mxu1 %v1021_v17 }
  0x67   : > { %459 = vmatmul.mubr.bf16.vlgmr.msra.gmra.mrb[0].mxu0 %v1022_v18  ;;  %467 = vmatmul.mubr.bf16.vlgmr.msra.gmra.mrb[0].mxu1 %v1025_v19 }
  0xd2   : > { %v1343_v49 = vpop.permute.xlu1 (%p272_p13), %525  ;;  %v1345_v50 = vpop.permute.xlu0 (%p272_p13), %519 }
  0xd3   : > { %vm532_vm0 = vcmp.eq.s32.totalorder (%p272_p13), %v1338_v47, %v1343_v49  ;;  %vm530_vm1 = vcmp.eq.s32.totalorder (%p272_p13), %v1338_v47, %v1345_v50 }
  0xd6   : > { %v1361_v54 = vpop.permute.xlu1 (%p272_p13), %528  ;;  %v1363_v55 = vpop.permute.xlu0 (%p272_p13), %522 }
  0xd7   : > { %vm531_vm2 = vcmp.eq.s32.totalorder (%p272_p13), %v1338_v47, %v1363_v55  ;;  %vm533_vm3 = vcmp.eq.s32.totalorder (%p272_p13), %v1338_v47, %v1361_v54 }
 0x13a   : > { %v897_v20 = vpop.f32.mrb[0].mxu0  ;;  %v903_v21 = vpop.f32.mrb[0].mxu1  ;;  %501 = sbr.rel (!%p272_p13) target bundleno = 645 (0x285), region = 48 }
 0x13b   : > { %v898_v22 = vpop.f32.mrb[1].mxu0  ;;  %v904_v23 = vpop.f32.mrb[1].mxu1 }
 0x13c   : > { %v899_v24 = vadd.f32 %v898_v22, %v897_v20  ;;  %v905_v25 = vadd.f32 %v904_v23, %v903_v21  ;;  %v900_v26 = vpop.f32.mrb[2].mxu0  ;;  %v906_v27 = vpop.f32.mrb[2].mxu1 }
 0x13d   : > { %v901_v28 = vpop.f32.mrb[3].mxu0  ;;  %v907_v29 = vpop.f32.mrb[3].mxu1 }
 0x13e   : > { %478 = vst [vmem:[%s1312_s18] sm:$0xff] %v899_v24  ;;  %480 = vst [vmem:[%s1312_s18 + $0x10] sm:$0xff] %v905_v25  ;;  %v902_v30 = vadd.f32 %v901_v28, %v900_v26  ;;  %v908_v31 = vadd.f32 %v907_v29, %v906_v27  ;;  %v1039_v26 = vpop.eup (%p272_p13), %1038 }
 0x140   : > { %479 = vst [vmem:[%s1312_s18 + $0x8] sm:$0xff] %v902_v30  ;;  %481 = vst [vmem:[%s1312_s18 + $0x18] sm:$0xff] %v908_v31 }
 0x145   : > { %v1341_v48 = vld [vmem:[%s1312_s18] sm:$0xff]  ;;  %v1352_v51 = vld [vmem:[%s1312_s18 + $0x10] sm:$0xff] }
 0x146   : > { %v534_v52 = vsel %vm530_vm1, %v1341_v48, 0.0  ;;  %v536_v56 = vsel %vm532_vm0, %v1352_v51, 0.0 }
 0x147   : > { %538 = vadd.xlane.f32.xlu0 %v534_v52  ;;  %v1359_v53 = vld [vmem:[%s1312_s18 + $0x8] sm:$0xff]  ;;  %v1378_v58 = vld [vmem:[%s1312_s18 + $0x18] sm:$0xff] }
 0x148   : > { %v535_v57 = vsel %vm531_vm2, %v1359_v53, 0.0  ;;  %v537_v59 = vsel %vm533_vm3, %v1378_v58, 0.0 }
 0x149   : > { %540 = vadd.xlane.f32.xlu1 %v535_v57 }
 0x14b   : > { %542 = vadd.xlane.f32.xlu0 %v536_v56 }
 0x14f   : > { %544 = vadd.xlane.f32.xlu0 %v537_v59 }
 0x1d4   : > { %v1388_v1 = vpop.xlane.xlu0 %538 }
 0x1d5   : > { %v551_v2 = vmul.f32 %v1033_v63, %v1388_v1 }
 0x1d6   : > { %v1391_v6 = vpop.xlane.xlu1 %540 }
 0x1d7   : > { %v558_v4 = vmul.f32 %v551_v2, %v551_v2  ;;  %v869_v5 = vclamps-f32 %v551_v2, 0.9999999  ;;  %v553_v11 = vmul.f32 %v1035_v3, %v1391_v6 }
 0x1d8   : > { %v1395_v12 = vpop.xlane.xlu0 %542 }
 0x1d9   : > { %v562_v7 = vsub.f32 1.0, %v558_v4  ;;  %v574_v8 = vmul.f32 -6.0, %v558_v4  ;;  %vm602_vm4 = vcmp.le.f32.partialorder %v869_v5, 0.70710677  ;;  %vm610_vm5 = vcmp.le.f32.partialorder %v869_v5, 6.123234e-17 }
 0x1da   : > { %v606_v10 = vsel %vm602_vm4, 1, %v1171_v45  ;;  %vm622_vm6 = vcmp.le.f32.partialorder %v869_v5, -0.70710677  ;;  %v614_v13 = vsel %vm610_vm5, 1, %v1171_v45  ;;  %v559_v15 = vmul.f32 %v553_v11, %v553_v11 }
 0x1db   : > { %v618_v14 = vadd.s32 %v614_v13, %v606_v10  ;;  %v870_v16 = vclamps-f32 %v553_v11, 0.9999999  ;;  %v578_v17 = vmul.f32 %v574_v8, %v562_v7  ;;  %v626_v18 = vsel %vm622_vm6, 1, %v1171_v45 }
 0x1dc   : > { %v555_v19 = vmul.f32 %v1037_v9, %v1395_v12  ;;  %v563_v21 = vsub.f32 1.0, %v559_v15  ;;  %v575_v22 = vmul.f32 -6.0, %v559_v15  ;;  %v566_v23 = vmul.f32 %v558_v4, %v558_v4  ;;  %v1402_v31 = vpop.xlane.xlu0 %544 }
 0x1dd   : > { %v630_v20 = vadd.s32 %v626_v18, %v618_v14  ;;  %vm603_vm7 = vcmp.le.f32.partialorder %v870_v16, 0.70710677  ;;  %vm611_vm8 = vcmp.le.f32.partialorder %v870_v16, 6.123234e-17  ;;  %v586_v24 = vmul.f32 %v562_v7, %v562_v7 }
 0x1de   : > { %vm623_vm9 = vcmp.le.f32.partialorder %v870_v16, -0.70710677  ;;  %v582_v27 = vadd.f32 %v578_v17, %v566_v23  ;;  %v607_v28 = vsel %vm603_vm7, 1, %v1171_v45  ;;  %v615_v29 = vsel %vm611_vm8, 1, %v1171_v45 }
 0x1df   : > { %v638_v25 = vand.u32 1, %v630_v20  ;;  %v560_v30 = vmul.f32 %v555_v19, %v555_v19  ;;  %v634_v35 = vcvt.s32.f32 %v630_v20  ;;  %v579_v37 = vmul.f32 %v575_v22, %v563_v21 }
 0x1e0   : > { %v619_v39 = vadd.s32 %v615_v29, %v607_v28  ;;  %v627_v40 = vsel %vm623_vm9, 1, %v1171_v45  ;;  %v871_v43 = vclamps-f32 %v555_v19, 0.9999999  ;;  %v557_v52 = vmul.f32 %v1039_v26, %v1402_v31 }
 0x1e1   : > { %v642_v36 = vcvt.s32.f32 %v638_v25  ;;  %v564_v41 = vsub.f32 1.0, %v560_v30  ;;  %v576_v42 = vmul.f32 -6.0, %v560_v30  ;;  %v590_v56 = vadd.f32 %v586_v24, %v582_v27 }
 0x1e2   : > { %v631_v46 = vadd.s32 %v627_v40, %v619_v39  ;;  %v567_v57 = vmul.f32 %v559_v15, %v559_v15  ;;  %vm604_vm10 = vcmp.le.f32.partialorder %v871_v43, 0.70710677  ;;  %vm612_vm11 = vcmp.le.f32.partialorder %v871_v43, 6.123234e-17 }
 0x1e3   : > { %v646_v44 = vmul.f32 2.0, %v642_v36  ;;  %v658_v60 = vmul.f32 2.0, %v634_v35  ;;  %v608_v62 = vsel %vm604_vm10, 1, %v1171_v45  ;;  %v580_v0 = vmul.f32 %v576_v42, %v564_v41 }
 0x1e4   : > { %v639_v61 = vand.u32 1, %v631_v46  ;;  %v583_v63 = vadd.f32 %v579_v37, %v567_v57  ;;  %v616_v2 = vsel %vm612_vm11, 1, %v1171_v45  ;;  %vm624_vm12 = vcmp.le.f32.partialorder %v871_v43, -0.70710677 }
 0x1e5   : > { %v650_v59 = vsub.f32 1.0, %v646_v44  ;;  %v620_v5 = vadd.s32 %v616_v2, %v608_v62  ;;  %v561_v7 = vmul.f32 %v557_v52, %v557_v52  ;;  %v587_v8 = vmul.f32 %v563_v21, %v563_v21 }
 0x1e6   : > { %v643_v4 = vcvt.s32.f32 %v639_v61  ;;  %v635_v9 = vcvt.s32.f32 %v631_v46  ;;  %v568_v10 = vmul.f32 %v560_v30, %v560_v30  ;;  %v628_v11 = vsel %vm624_vm12, 1, %v1171_v45 }
 0x1e7   : > { %v654_v3 = vmul.f32 %v650_v59, %v590_v56  ;;  %v632_v15 = vadd.s32 %v628_v11, %v620_v5  ;;  %v670_v16 = vmul.f32 100.0, %v1388_v1  ;;  %v591_v17 = vadd.f32 %v587_v8, %v583_v63 }
 0x1e8   : > { %v647_v14 = vmul.f32 2.0, %v643_v4  ;;  %v584_v18 = vadd.f32 %v580_v0, %v568_v10  ;;  %v872_v19 = vclamps-f32 %v557_v52, 0.9999999  ;;  %v565_v24 = vsub.f32 1.0, %v561_v7 }
 0x1e9   : > { %v662_v13 = vsub.f32 %v654_v3, %v658_v60  ;;  %v640_v23 = vand.u32 1, %v632_v15  ;;  %v659_v25 = vmul.f32 2.0, %v635_v9  ;;  %v577_v26 = vmul.f32 -6.0, %v561_v7 }
 0x1ea   : > { %v651_v22 = vsub.f32 1.0, %v647_v14  ;;  %vm605_vm13 = vcmp.le.f32.partialorder %v872_v19, 0.70710677  ;;  %vm613_vm14 = vcmp.le.f32.partialorder %v872_v19, 6.123234e-17  ;;  %v588_v29 = vmul.f32 %v564_v41, %v564_v41 }
 0x1eb   : > { %v666_v20 = vmul.f32 %v662_v13, %v1324_v33  ;;  %v644_v28 = vcvt.s32.f32 %v640_v23  ;;  %vm625_vm15 = vcmp.le.f32.partialorder %v872_v19, -0.70710677  ;;  %v636_v30 = vcvt.s32.f32 %v632_v15 }
 0x1ec   : > { %v655_v27 = vmul.f32 %v651_v22, %v591_v17  ;;  %v609_v1 = vsel %vm605_vm13, 1, %v1171_v45  ;;  %v617_v35 = vsel %vm613_vm14, 1, %v1171_v45  ;;  %v671_v40 = vmul.f32 100.0, %v1391_v6 }
 0x1ed   : > { %v674_v21 = vadd.f32 %v670_v16, %v666_v20  ;;  %v648_v37 = vmul.f32 2.0, %v644_v28  ;;  %v621_v33 = vadd.s32 %v617_v35, %v609_v1  ;;  %v592_v42 = vadd.f32 %v588_v29, %v584_v18 }
 0x1ee   : > { %v663_v36 = vsub.f32 %v655_v27, %v659_v25  ;;  %v629_v43 = vsel %vm625_vm15, 1, %v1171_v45  ;;  %v581_v52 = vmul.f32 %v577_v26, %v565_v24  ;;  %v569_v41 = vmul.f32 %v561_v7, %v561_v7 }
 0x1ef   : > { %v679_v39 = vmul.f32 0.00990099, %v674_v21  ;;  %v652_v46 = vsub.f32 1.0, %v648_v37  ;;  %v633_v56 = vadd.s32 %v629_v43, %v621_v33  ;;  %v660_v60 = vmul.f32 2.0, %v636_v30 }
 0x1f0   : > { %v667_v44 = vmul.f32 %v663_v36, %v1332_v38  ;;  %v585_v63 = vadd.f32 %v581_v52, %v569_v41  ;;  %v672_v6 = vmul.f32 100.0, %v1395_v12  ;;  %v589_v45 = vmul.f32 %v565_v24, %v565_v24 }
 0x1f1   : > { %685 = vperm.xlu1 %1030, %v679_v39   ;;  %v656_v59 = vmul.f32 %v652_v46, %v592_v42  ;;  %v641_v61 = vand.u32 1, %v633_v56  ;;  %v637_v4 = vcvt.s32.f32 %v633_v56 }
 0x1f2   : > { %v675_v57 = vadd.f32 %v671_v40, %v667_v44  ;;  %v593_v8 = vadd.f32 %v589_v45, %v585_v63 }
 0x1f3   : > { %v664_v62 = vsub.f32 %v656_v59, %v660_v60  ;;  %v645_v0 = vcvt.s32.f32 %v641_v61  ;;  %v661_v10 = vmul.f32 2.0, %v637_v4 }
 0x1f4   : > { %v680_v2 = vmul.f32 0.00990099, %v675_v57 }
 0x1f5   : > { %v668_v3 = vmul.f32 %v664_v62, %v1321_v32  ;;  %v649_v38 = vmul.f32 2.0, %v645_v0  ;;  %v673_v32 = vmul.f32 100.0, %v1402_v31 }
 0x1f6   : > { %690 = vperm.xlu0 %1031, %v680_v2  }
 0x1f7   : > { %v676_v5 = vadd.f32 %v672_v6, %v668_v3  ;;  %v653_v7 = vsub.f32 1.0, %v649_v38 }
 0x1f9   : > { %v657_v9 = vmul.f32 %v653_v7, %v593_v8  ;;  %v681_v11 = vmul.f32 0.00990099, %v676_v5 }
 0x1fb   : > { %v665_v13 = vsub.f32 %v657_v9, %v661_v10  ;;  %695 = vperm.xlu1 %1030, %v681_v11  }
 0x1fd   : > { %v669_v14 = vmul.f32 %v665_v13, %v1327_v34 }
 0x1ff   : > { %v677_v12 = vadd.f32 %v673_v32, %v669_v14 }
 0x201   : > { %v682_v15 = vmul.f32 0.00990099, %v677_v12 }
 0x203   : > { %700 = vperm.xlu1 %1030, %v682_v15  }
 0x270   : > { %v686_v16 = vpop.permute.xlu1 %685 }
 0x271   : > { %v703_v17 = vsel %vm530_vm1, %v686_v16, %v1341_v48 }
 0x272   : > { %707 = vst [vmem:[%s1312_s18] sm:$0xff] %v703_v17 }
 0x275   : > { %v691_v18 = vpop.permute.xlu0 %690 }
 0x276   : > { %v704_v19 = vsel %vm531_vm2, %v691_v18, %v1359_v53 }
 0x277   : > { %708 = vst [vmem:[%s1312_s18 + $0x8] sm:$0xff] %v704_v19 }
 0x27a   : > { %v696_v34 = vpop.permute.xlu1 %695 }
 0x27b   : > { %v705_v31 = vsel %vm532_vm0, %v696_v34, %v1352_v51 }
 0x27c   : > { %709 = vst [vmem:[%s1312_s18 + $0x10] sm:$0xff] %v705_v31 }
 0x282   : > { %v701_v20 = vpop.permute.xlu1 %700 }
 0x283   : > { %v706_v48 = vsel %vm533_vm3, %v701_v20, %v1378_v58 }
 0x284   : > { %710 = vst [vmem:[%s1312_s18 + $0x18] sm:$0xff] %v706_v48 }
 0x285 PF: > { %s880_s19 = sshll.u32 %s1156_s22, 9  ;;  %s726_s30 = sshll.u32 %s1312_s18, 4  ;;  %s1447_s30 = int_to_ptr.vmem [resolvable:$true] %s726_s30 }
 0x286   : > { %s1444_s28 = scalar_lea.hbm %s1501_s4, %s880_s19  ;;  %s1451_s9 = scalar_lea.sflag [#allocation6], %s245_s16 }
 0x287   : > { %s1080_s12 = scalar_lea.vmem %s1447_s30, 512  ;;  %p1513_p2 = scmp.ne.s32.totalorder %s1506_s29, 0 }
 0x288   : > { %p1081_p1 = scmp.ne.s32.totalorder %s1447_s30, %s1080_s12  ;;  %s1172_s22 = smov [#allocation7]  }
 0x289   : > { %s1084_s11 = sshll.u32 %s1172_s22, 4  ;;  %s1085_s11 = int_to_ptr.vmem [resolvable:$false] %s1084_s11 }
 0x28a   : > { %p1082_p4 = pnand %p1081_p1, %p1513_p2  ;;  %s1086_s13 = scalar_lea.vmem %s1085_s11, 1024 }
 0x28b   : > { %p1087_p8 = scmp.lt.s32.totalorder %s1447_s30, %s1085_s11  ;;  %p1088_p10 = scmp.lt.s32.totalorder %s1086_s13, %s1080_s12 }
 0x28c   : > { %p1083_p6 = pneg %p1082_p4 }
 0x28d   : > { %p1089_p11 = por %p1088_p10, %p1087_p8 }
 0x28f   : > { %p1090_p12 = pnand %p1089_p11, %p1083_p6 }
 0x291   : > { %1093 = shalt.err (!%p1090_p12)
}
 0x292   : > { %s1094_s10 = scalar_lea.hbm %s1444_s28, 512  ;;  %s1098_s14 = scalar_lea.hbm %s1501_s4, 1024 }
 0x293   : > { %p1095_p0 = scmp.ne.s32.totalorder %s1444_s28, %s1094_s10  ;;  %p1099_p7 = scmp.lt.u32.totalorder %s1444_s28, %s1501_s4 }
 0x294   : > { %p1100_p9 = scmp.lt.u32.totalorder %s1098_s14, %s1094_s10  ;;  %p1102_p1 = scmp.lt.u32.totalorder %s1094_s10, %s1444_s28 }
 0x295   : > { %p1096_p3 = pnand %p1095_p0, %p1513_p2 }
 0x296   : > { %p1101_p13 = por %p1100_p9, %p1099_p7 }
 0x297   : > { %p1097_p5 = pneg %p1096_p3 }
 0x298   : > { %p1103_p4 = por %p1102_p1, %p1101_p13 }
 0x29a   : > { %p1104_p6 = pnand %p1103_p4, %p1097_p5 }
 0x29c   : > { %1107 = shalt.err (!%p1104_p6)
}
 0x29d   : > { %s1173_s17 = smov 128   ;;  %s1174_s18 = smov 8  }
 0x29e   : > { %937 = dma.vmem_to_hbm [thread:$0]  (%p1513_p2), %s1447_s30, 512, %s1444_s28, %s1451_s9, %s1173_s17, %s1173_s17, %s1174_s18  }
 0x29f PF: > { %p949_p8 = scmp.ge.s32.totalorder %s1164_s24, 2  ;;  %s741_s19 = sand.u32 1, %s1144_s20  }
 0x2a0   : > { %p1514_p10 = scmp.ne.s32.totalorder %s1507_s5, 0  ;;  %s742_s25 = scalar_lea.sflag [#allocation6], %s741_s19 }
 0x2a2   : > { %p944_p11 = pnand %p949_p8, %p1514_p10 }
 0x2a4   : > { %1139 = dma.done.wait (!%p944_p11), %s742_s25, 512  }
 0x2a5   : > { %1141 = vsyncadd (!%p944_p11), %s742_s25, 4294966784  ;;  %s24_s24 = sadd.s32 1, %s1164_s24   ;;  %s1515_s20 = smov %s1148_s21 }
 0x2a6   : > { %p21_p12 = scmp.ge.s32.totalorder %s24_s24, 4   ;;  %s1516_s21 = smov %s1152_s0 }
 0x2a7   : > { %s1517_s0 = smov %s1256_s6  ;;  %s1518_s22 = smov %s1160_s23 }
 0x2a8   : > { %s1519_s23 = smov %s1521_s27  ;;  %23 = sbr.rel (!%p21_p12) target bundleno = 20 (0x14), region = 88 }
 0x2af   :  { %747 = vsyncpa [#allocation5], 1 }
 0x2b0   :  { %749 = vsyncpa [#allocation5 + $0x1], 1 }
 0x2b1   :  { %750 = vsyncpa [#allocation6], 1 }
 0x2b2   :  { %752 = vsyncpa [#allocation6 + $0x1], 1 }

</bundles_post_ra>
